<compile_context>
chip_gen: v5e
topology: v5e:2x2
jax: 0.10.0
libtpu: 0.0.40
codegen_flags: <defaults>
</compile_context>

<pallas_src>
import math

import jax
import jax.numpy as jnp
from jax import lax
from jax.experimental import pallas as pl
from jax.experimental.pallas import tpu as pltpu


# --------------------------------------------------------------------------
# Fused kernel: CLS prepend + emb2enc linear (review item 1 — the big win).
# --------------------------------------------------------------------------
def _cls_linear_kernel(cls_ref, x_ref, w_ref, b_ref, o_ref):
    """One grid step: TB batch rows x TH hidden columns.

    cls_ref : (1, D)        VMEM — CLS embedding (same block every step)
    x_ref   : (TB, L, D)    VMEM — batch_emb tile
    w_ref   : (D, TH)       VMEM — emb2enc weight tile (already [D, H] layout)
    b_ref   : (1, TH)       VMEM — emb2enc bias tile
    o_ref   : (TB, L+1, TH) VMEM — output tile of emb2enc(concat([cls, x], 1))
    """
    tb, seq_len, emb = x_ref.shape
    th = o_ref.shape[-1]

    w = w_ref[...]
    b = b_ref[...]                                     # (1, TH) — broadcasts

    # Body rows: one MXU matmul over all TB*L rows of this tile.  The reshape
    # is a layout-preserving shape_cast when L % 8 == 0 (sublane aligned).
    x2 = x_ref[...].reshape(tb * seq_len, emb)
    y = jnp.dot(x2, w, preferred_element_type=jnp.float32) + b   # (TB*L, TH)

    # CLS output row: identical for every batch row -> compute once, broadcast.
    cls_row = jnp.dot(cls_ref[...], w, preferred_element_type=jnp.float32) + b

    o_ref[:, 0:1, :] = jnp.broadcast_to(cls_row, (tb, 1, th)).astype(o_ref.dtype)
    o_ref[:, 1:, :] = y.reshape(tb, seq_len, th).astype(o_ref.dtype)


def cls_prepend_emb2enc(cls_weight, batch_emb, w_emb2enc, b_emb2enc, *,
                        batch_tile=None, hidden_tile=None,
                        target_block_bytes=2 * 1024 * 1024):
    """emb2enc(concat([cls_weight.repeat(N,1,1), batch_emb], 1)) without ever
    materializing the [N, L+1, D] concat in HBM.

    cls_weight : [1, 1, D]
    batch_emb  : [N, L, D]
    w_emb2enc  : [D, H]   (transposed torch Linear weight)
    b_emb2enc  : [H]
    returns    : [N, L+1, H]
    """
    n, seq_len, emb = batch_emb.shape
    assert cls_weight.shape == (1, 1, emb), cls_weight.shape
    d_in, hidden = w_emb2enc.shape
    assert d_in == emb, (d_in, emb)

    cls2d = cls_weight.reshape(1, emb).astype(batch_emb.dtype)
    b2d = b_emb2enc.reshape(1, hidden).astype(jnp.float32)

    itemsize = jnp.dtype(batch_emb.dtype).itemsize

    # Hidden tile: whole H unless H is large and 128-aligned (block constraint:
    # last dim must be a multiple of 128 or the full extent).
    if hidden_tile is None:
        hidden_tile = hidden if (hidden <= 1024 or hidden % 128 != 0) else 512
    th = int(min(hidden, hidden_tile))

    # Batch tile: big enough that each block is ~target_block_bytes, so the
    # ~0.35us per-grid-step overhead is amortized.  (Bump target_block_bytes on
    # v7x if DMA is still exposed — blocks stay far under the VMEM limit.)
    row_bytes = max(1, (seq_len + 1) * max(th, emb) * itemsize)
    if batch_tile is None:
        batch_tile = max(1, target_block_bytes // row_bytes)
    tb = int(min(n, batch_tile))

    grid = (pl.cdiv(n, tb), pl.cdiv(hidden, th))

    return pl.pallas_call(
        _cls_linear_kernel,
        out_shape=jax.ShapeDtypeStruct((n, seq_len + 1, hidden), batch_emb.dtype),
        grid_spec=pltpu.PrefetchScalarGridSpec(
            num_scalar_prefetch=0,
            grid=grid,
            in_specs=[
                pl.BlockSpec((1, emb), lambda i, j: (0, 0)),
                pl.BlockSpec((tb, seq_len, emb), lambda i, j: (i, 0, 0)),
                pl.BlockSpec((emb, th), lambda i, j: (0, j)),
                pl.BlockSpec((1, th), lambda i, j: (0, j)),
            ],
            out_specs=pl.BlockSpec((tb, seq_len + 1, th), lambda i, j: (i, 0, j)),
        ),
        # Independent output tiles -> safe to shard; on v7x this only halves
        # per-step/descriptor overhead (both TCs share HBM bandwidth).
        compiler_params=pltpu.CompilerParams(
            dimension_semantics=("parallel", "parallel"),
        ),
    )(cls2d, batch_emb, w_emb2enc, b2d)


# --------------------------------------------------------------------------
# Standalone TabCLSEmb concat (for call sites that need the raw [N, L+1, D]).
# --------------------------------------------------------------------------
def _cls_concat_staged_kernel(w_ref, x_ref, o_ref):
    """Small-row path: assemble the whole (TB, L+1, D) block in VMEM so the
    HBM writeback is one contiguous block (no tiny strided DMA segments)."""
    tb = o_ref.shape[0]
    emb = o_ref.shape[-1]
    o_ref[:, 0:1, :] = jnp.broadcast_to(w_ref[...], (tb, 1, emb)).astype(o_ref.dtype)
    o_ref[:, 1:, :] = x_ref[...].astype(o_ref.dtype)


def _make_cls_concat_hbm_kernel(body_chunks, cls_chunks, seq_len):
    """Large-row path: single invocation, a handful of big HBM->HBM DMAs.

    All DMAs are started before any wait -> several transfers in flight, no
    per-step sync stall, no per-grid-step pipeline overhead.
    """
    def kernel(w_ref, x_hbm, o_hbm, cls_vmem, body_sem, cls_sem):
        # Kick off the big body copies first (they need no VMEM prep).  The +1
        # sequence offset lives entirely in the destination DMA window.
        body_copies = []
        for idx, (start, size) in enumerate(body_chunks):
            cp = pltpu.make_async_copy(
                x_hbm.at[pl.ds(start, size)],
                o_hbm.at[pl.ds(start, size), pl.ds(1, seq_len), :],
                body_sem.at[idx],
            )
            cp.start()
            body_copies.append(cp)

        # Fill the CLS staging tile exactly once (contents are identical for
        # every chunk), then stream it out to out[:, 0:1, :] in a few DMAs.
        cls_vmem[...] = jnp.broadcast_to(w_ref[...], cls_vmem.shape).astype(
            cls_vmem.dtype
        )
        cls_copies = []
        for idx, (start, size) in enumerate(cls_chunks):
            cp = pltpu.make_async_copy(
                cls_vmem.at[pl.ds(0, size)],
                o_hbm.at[pl.ds(start, size), pl.ds(0, 1), :],
                cls_sem.at[idx],
            )
            cp.start()
            cls_copies.append(cp)

        # Waits deferred to the very end: everything above overlaps.
        for cp in body_copies:
            cp.wait()
        for cp in cls_copies:
            cp.wait()

    return kernel


def tab_cls_emb(weight, batch_emb, *, batch_tile=None,
                target_block_bytes=2 * 1024 * 1024,
                small_row_bytes=4096, force_hbm_path=False):
    """Pallas implementation of TabCLSEmb.forward.

    weight:    [1, 1, D]
    batch_emb: [N, L, D]
    returns:   [N, L+1, D]
    """
    n, seq_len, emb = batch_emb.shape
    assert weight.shape == (1, 1, emb), weight.shape
    weight = weight.astype(batch_emb.dtype)

    itemsize = jnp.dtype(batch_emb.dtype).itemsize
    row_bytes = seq_len * emb * itemsize
    out_shape = jax.ShapeDtypeStruct((n, seq_len + 1, emb), batch_emb.dtype)

    if (row_bytes < small_row_bytes) and not force_hbm_path:
        # ---- VMEM-staged path (small rows): contiguous output blocks. ----
        if batch_tile is None:
            batch_tile = max(1, target_block_bytes
                             // max(1, (seq_len + 1) * emb * itemsize))
        tb = int(min(n, batch_tile))
        grid = (pl.cdiv(n, tb),)
        return pl.pallas_call(
            _cls_concat_staged_kernel,
            out_shape=out_shape,
            grid_spec=pltpu.PrefetchScalarGridSpec(
                num_scalar_prefetch=0,
                grid=grid,
                in_specs=[
                    pl.BlockSpec((1, 1, emb), lambda i: (0, 0, 0)),
                    pl.BlockSpec((tb, seq_len, emb), lambda i: (i, 0, 0)),
                ],
                out_specs=pl.BlockSpec((tb, seq_len + 1, emb), lambda i: (i, 0, 0)),
            ),
            compiler_params=pltpu.CompilerParams(
                # Disjoint blocks (Pallas handles the ragged final block), so
                # "parallel" is race-free; on v7x it only trims per-step
                # overhead, not bandwidth.
                dimension_semantics=("parallel",),
            ),
        )(weight, batch_emb)

    # ---- HBM->HBM path (large rows): single invocation, few big DMAs. ----
    min_chunk_bytes = 1 << 20
    total_bytes = n * row_bytes
    n_body_chunks = int(max(1, min(8, n,
                                   -(-total_bytes // min_chunk_bytes))))
    base, rem = divmod(n, n_body_chunks)
    body_chunks, start = [], 0
    for c in range(n_body_chunks):
        size = base + (1 if c < rem else 0)
        body_chunks.append((start, size))
        start += size

    cls_stage_rows = int(min(n, max(1, (256 * 1024) // max(1, emb * itemsize))))
    cls_chunks, start = [], 0
    while start < n:
        size = min(cls_stage_rows, n - start)
        cls_chunks.append((start, size))
        start += size

    kernel = _make_cls_concat_hbm_kernel(body_chunks, cls_chunks, seq_len)
    return pl.pallas_call(
        kernel,
        out_shape=out_shape,
        grid_spec=pltpu.PrefetchScalarGridSpec(
            num_scalar_prefetch=0,
            grid=(1,),
            in_specs=[
                pl.BlockSpec((1, 1, emb), lambda i: (0, 0, 0)),
                pl.BlockSpec(memory_space=pl.ANY),   # x stays in HBM
            ],
            out_specs=pl.BlockSpec(memory_space=pl.ANY),  # out written via DMA
            scratch_shapes=[
                pltpu.VMEM((cls_stage_rows, 1, emb), batch_emb.dtype),
                pltpu.SemaphoreType.DMA((len(body_chunks),)),
                pltpu.SemaphoreType.DMA((len(cls_chunks),)),
            ],
        ),
        compiler_params=pltpu.CompilerParams(
            dimension_semantics=("arbitrary",),
        ),
    )(weight, batch_emb)


def init_tab_cls_emb_weight(key, emb_size, dtype=jnp.float32):
    """Matches nn.init.uniform_(w, a=-1/sqrt(D), b=1/sqrt(D))."""
    bound = 1.0 / math.sqrt(emb_size)
    return jax.random.uniform(
        key, (1, 1, emb_size), dtype=dtype, minval=-bound, maxval=bound
    )


if __name__ == "__main__":
    # Small shapes consistent with the forward: N sequences of L columns,
    # emb_size D, emb2enc hidden size H.
    N, L, D, H = 2, 8, 32, 64
    key = jax.random.PRNGKey(0)
    k_w, k_x, k_lin, k_b, k_x2 = jax.random.split(key, 5)

    cls_w = init_tab_cls_emb_weight(k_w, D)                         # [1,1,D]
    batch_emb = jax.random.normal(k_x, (N, L, D), dtype=jnp.float32)
    w_emb2enc = jax.random.normal(k_lin, (D, H), dtype=jnp.float32) / math.sqrt(D)
    b_emb2enc = jax.random.normal(k_b, (H,), dtype=jnp.float32)

    # --- Fused CLS-prepend + emb2enc (the review's "fuse into consumer"). ---
    out = jax.block_until_ready(
        cls_prepend_emb2enc(cls_w, batch_emb, w_emb2enc, b_emb2enc)
    )
    cat_ref = jnp.concatenate(
        [jnp.broadcast_to(cls_w, (N, 1, D)), batch_emb], axis=1
    )
    ref = jnp.einsum("nld,dh->nlh", cat_ref, w_emb2enc,
                     precision=lax.Precision.HIGHEST) + b_emb2enc
    assert out.shape == (N, L + 1, H), out.shape
    assert jnp.allclose(out, ref, rtol=2e-2, atol=2e-2), "fused kernel mismatch"

    # --- Standalone concat, staged (small-row) path, ragged batch. ---
    N2 = 5
    batch_emb2 = jax.random.normal(k_x2, (N2, L, D), dtype=jnp.float32)
    out2 = jax.block_until_ready(tab_cls_emb(cls_w, batch_emb2, batch_tile=2))
    ref2 = jnp.concatenate(
        [jnp.broadcast_to(cls_w, (N2, 1, D)), batch_emb2], axis=1
    )
    assert out2.shape == (N2, L + 1, D), out2.shape
    assert jnp.allclose(out2, ref2), "staged concat mismatch (ragged batch)"

    # --- Standalone concat, HBM->HBM bulk-DMA path (forced at small shape). ---
    out3 = jax.block_until_ready(
        tab_cls_emb(cls_w, batch_emb2, force_hbm_path=True)
    )
    assert out3.shape == (N2, L + 1, D), out3.shape
    assert jnp.allclose(out3, ref2), "HBM-DMA concat mismatch"

    print("KERNEL_OK")
</pallas_src>

<mosaic_0001>
module attributes {stable_mosaic.version = 11 : i64} {
  func.func @_cls_linear_kernel(%arg0: i32, %arg1: i32, %arg2: memref<1x32xf32, #tpu.memory_space<vmem>>, %arg3: memref<2x8x32xf32, #tpu.memory_space<vmem>>, %arg4: memref<32x64xf32, #tpu.memory_space<vmem>>, %arg5: memref<1x64xf32, #tpu.memory_space<vmem>>, %arg6: memref<2x9x64xf32, #tpu.memory_space<vmem>>) attributes {dimension_semantics = [#tpu.dimension_semantics<parallel>, #tpu.dimension_semantics<parallel>], iteration_bounds = array<i64: 1, 1>, scalar_prefetch = 0 : i64, scratch_operands = 0 : i64, tpu.core_type = #tpu.core_type<tc>, window_params = [{pipeline_mode = #tpu.pipeline_mode<synchronous>, transform_indices = @transform_0, window_bounds = array<i64: 1, 32>}, {transform_indices = @transform_1, window_bounds = array<i64: 2, 8, 32>}, {transform_indices = @transform_2, window_bounds = array<i64: 32, 64>}, {transform_indices = @transform_3, window_bounds = array<i64: 1, 64>}, {transform_indices = @transform_4, window_bounds = array<i64: 2, 9, 64>}]} {
    %c0 = arith.constant 0 : index
    %c0_0 = arith.constant 0 : index
    %0 = vector.load %arg4[%c0, %c0_0] : memref<32x64xf32, #tpu.memory_space<vmem>>, vector<32x64xf32>
    %c0_1 = arith.constant 0 : index
    %c0_2 = arith.constant 0 : index
    %1 = vector.load %arg5[%c0_1, %c0_2] : memref<1x64xf32, #tpu.memory_space<vmem>>, vector<1x64xf32>
    %c0_3 = arith.constant 0 : index
    %c0_4 = arith.constant 0 : index
    %c0_5 = arith.constant 0 : index
    %2 = vector.load %arg3[%c0_3, %c0_4, %c0_5] : memref<2x8x32xf32, #tpu.memory_space<vmem>>, vector<2x8x32xf32>
    %3 = vector.shape_cast %2 : vector<2x8x32xf32> to vector<16x32xf32>
    %cst = arith.constant dense<0.000000e+00> : vector<16x64xf32>
    %4 = tpu.matmul %3, %0, %cst {dimension_numbers = #tpu.dot_dimension_numbers<[1], [0], [0], [1], [0, 0, 1, 1], [], []>} : vector<16x32xf32>, vector<32x64xf32>, vector<16x64xf32> -> vector<16x64xf32>
    %5 = vector.broadcast %1 : vector<1x64xf32> to vector<16x64xf32>
    %6 = arith.addf %4, %5 : vector<16x64xf32>
    %c0_6 = arith.constant 0 : index
    %c0_7 = arith.constant 0 : index
    %7 = vector.load %arg2[%c0_6, %c0_7] : memref<1x32xf32, #tpu.memory_space<vmem>>, vector<1x32xf32>
    %cst_8 = arith.constant dense<0.000000e+00> : vector<1x64xf32>
    %8 = tpu.matmul %7, %0, %cst_8 {dimension_numbers = #tpu.dot_dimension_numbers<[1], [0], [0], [1], [0, 0, 1, 1], [], []>} : vector<1x32xf32>, vector<32x64xf32>, vector<1x64xf32> -> vector<1x64xf32>
    %9 = arith.addf %8, %1 : vector<1x64xf32>
    %10 = vector.shape_cast %9 : vector<1x64xf32> to vector<1x1x64xf32>
    %11 = vector.broadcast %10 : vector<1x1x64xf32> to vector<2x1x64xf32>
    %c0_9 = arith.constant 0 : index
    %c0_10 = arith.constant 0 : index
    %c0_11 = arith.constant 0 : index
    %12 = vector.load %arg6[%c0_9, %c0_10, %c0_11] : memref<2x9x64xf32, #tpu.memory_space<vmem>>, vector<2x1x64xf32>
    tpu.vector_store %arg6[%c0_9, %c0_10, %c0_11], %11 {strides = array<i32>} : memref<2x9x64xf32, #tpu.memory_space<vmem>>, vector<2x1x64xf32>,
    %13 = vector.shape_cast %6 : vector<16x64xf32> to vector<2x8x64xf32>
    %c0_12 = arith.constant 0 : index
    %c1 = arith.constant 1 : index
    %c0_13 = arith.constant 0 : index
    %14 = vector.load %arg6[%c0_12, %c1, %c0_13] : memref<2x9x64xf32, #tpu.memory_space<vmem>>, vector<2x8x64xf32>
    tpu.vector_store %arg6[%c0_12, %c1, %c0_13], %13 {strides = array<i32>} : memref<2x9x64xf32, #tpu.memory_space<vmem>>, vector<2x8x64xf32>,
    return
  }
  func.func @transform_0(%arg0: i32, %arg1: i32) -> (i32, i32) {
    %c0_i32 = arith.constant 0 : i32
    %c0_i32_0 = arith.constant 0 : i32
    %c0_i32_1 = arith.constant 0 : i32
    return %c0_i32, %c0_i32_0 : i32, i32
  }
  func.func @transform_1(%arg0: i32, %arg1: i32) -> (i32, i32, i32) {
    %c0_i32 = arith.constant 0 : i32
    %c0_i32_0 = arith.constant 0 : i32
    %c0_i32_1 = arith.constant 0 : i32
    return %arg0, %c0_i32, %c0_i32_0 : i32, i32, i32
  }
  func.func @transform_2(%arg0: i32, %arg1: i32) -> (i32, i32) {
    %c0_i32 = arith.constant 0 : i32
    %c0_i32_0 = arith.constant 0 : i32
    return %c0_i32, %arg1 : i32, i32
  }
  func.func @transform_3(%arg0: i32, %arg1: i32) -> (i32, i32) {
    %c0_i32 = arith.constant 0 : i32
    %c0_i32_0 = arith.constant 0 : i32
    return %c0_i32, %arg1 : i32, i32
  }
  func.func @transform_4(%arg0: i32, %arg1: i32) -> (i32, i32, i32) {
    %c0_i32 = arith.constant 0 : i32
    %c0_i32_0 = arith.constant 0 : i32
    return %arg0, %c0_i32, %arg1 : i32, i32, i32
  }
}

</mosaic_0001>

<bundles_post_ra>
// kernel: tpu_custom_call.1
= control target key start
LH: loop header
LB: loop body
LE: loop exit
PB: predicated region body
PF: predicated region fallthrough
CT: control target
= control target key end

     0   :  { %9 = vsyncpa [#allocation3], 0  ;;  %s284_s0 = inlined_call_operand.hbm [shape: f32[1,32], index: 0, kind: input, shape index: {}]   ;;  %s285_s1 = inlined_call_operand.hbm [shape: f32[2,8,32], index: 1, kind: input, shape index: {}]   ;;  %s286_s2 = inlined_call_operand.hbm [shape: f32[32,64], index: 2, kind: input, shape index: {}]   ;;  %s287_s3 = inlined_call_operand.vmem [shape: f32[1,64], index: 3, kind: input, shape index: {}]   ;;  %s288_s4 = inlined_call_operand.vmem [shape: f32[2,9,64], index: 4, kind: output, shape index: {}]  }
   0x1   :  { %10 = vsyncpa [#allocation5], 0  ;;  %s26_s17 = sshll.u32 %s285_s1, 4  ;;  %s227_s18 = smov [#allocation4]   ;;  %s27_s17 = int_to_ptr.hbm [resolvable:$true] %s26_s17 }
   0x2   :  { %s28_s19 = sshll.u32 %s227_s18, 4  ;;  %s16_s22 = sshll.u32 %s284_s0, 4  ;;  %s29_s19 = int_to_ptr.vmem [resolvable:$true] %s28_s19  ;;  %s17_s22 = int_to_ptr.hbm [resolvable:$true] %s16_s22 }
   0x3   :  { %s228_s23 = smov 128   ;;  %s229_s24 = smov 8  }
   0x4   :  { %34 = dma.hbm_to_vmem [thread:$0]  %s27_s17, 256, %s29_s19, [#allocation5], %s228_s23, %s228_s23, %s229_s24  }
   0x5   :  { %s230_s25 = smov [#allocation2]   ;;  %s39_s29 = sshll.u32 %s286_s2, 4  ;;  %s40_s29 = int_to_ptr.hbm [resolvable:$true] %s39_s29 }
   0x6   :  { %s18_s26 = sshll.u32 %s230_s25, 4  ;;  %s231_s1 = smov [#allocation6]   ;;  %s19_s26 = int_to_ptr.vmem [resolvable:$true] %s18_s26 }
   0x7   :  { %21 = dma.hbm_to_vmem [thread:$0]  %s17_s22, 16, %s19_s26, [#allocation3]  }
   0x8   :  { %s41_s30 = sshll.u32 %s231_s1, 4  ;;  %s42_s30 = int_to_ptr.vmem [resolvable:$true] %s41_s30 }
   0x9   :  { %47 = dma.hbm_to_vmem [thread:$0]  %s40_s29, 512, %s42_s30, [#allocation5], %s228_s23, %s228_s23, %s229_s24  }
   0xa   :  { %223 = dma.done.wait [#allocation3], 16  }
   0xb   :  { %224 = vsyncadd [#allocation3], 4294967280 }
   0xc   :  { %225 = dma.done.wait [#allocation5], 768  }
   0xd   :  { %226 = vsyncadd [#allocation5], 4294966528  ;;  %v65_v0 = vld [vmem:[#allocation6 + $0x18] sm:$0xff]  ;;  %v64_v1 = vld [vmem:[#allocation6 + $0x10] sm:$0xff]  ;;  %vm72_vm0 = vcmask 261120   ;;  %vm129_vm1 = vcmask 523264  }
   0xe   :  { %141 = vmatpush.msra.mxu2 %v65_v0  ;;  %91 = vmatpush.msra.mxu0 %v65_v0  ;;  %v63_v2 = vld [vmem:[#allocation6 + $0x8] sm:$0xff]  ;;  %v62_v3 = vld [vmem:[#allocation6] sm:$0xff]  ;;  %v68_v4 = vld [vmem:[#allocation4 + $0x8] sm:$0xff]  ;;  %vm126_vm2 = vcmask 516096  }
   0xf   :  { %118 = vmatpush.msra.mxu1 %v65_v0  ;;  %v67_v5 = vld [vmem:[#allocation4] sm:$0xff]  ;;  %v102_v6 = vld [vmem:[#allocation2] sm:$0x1] }
  0x10   :  { %142 = vmatpush.msra.mxu2 %v64_v1  ;;  %92 = vmatpush.msra.mxu0 %v64_v1  ;;  %v150_v7 = vld [vmem:[%s287_s3] ss:$0 sm:$0xff] }
  0x11   :  { %119 = vmatpush.msra.mxu1 %v64_v1  ;;  %v66_v8 = vld [vmem:[%s287_s3] sm:$0x1] }
  0x12   :  { %143 = vmatpush.msra.mxu2 %v63_v2  ;;  %93 = vmatpush.msra.mxu0 %v63_v2 }
  0x13   :  { %120 = vmatpush.msra.mxu1 %v63_v2 }
  0x14   :  { %144 = vmatpush.msra.mxu2 %v62_v3  ;;  %94 = vmatpush.msra.mxu0 %v62_v3 }
  0x15   :  { %139 = vmatmul.msk.f32.vlgmr.msra.gmra.mxu2 %vm72_vm0, %v68_v4  ;;  %121 = vmatpush.msra.mxu1 %v62_v3 }
  0x16   :  { %138 = vmatmul.msk.f32.vlgmr.msra.gmra.mxu0 %vm72_vm0, %v67_v5  ;;  %140 = vmatmul.msk.f32.vlgmr.msra.gmra.mxu1 %vm72_vm0, %v102_v6 }
  0x93   :  { %v96_v9 = vpop.f32.mrf.mxu0  ;;  %v123_v10 = vpop.f32.mrf.mxu1 }
  0x94   :  { %v97_v11 = vadd.f32 %v150_v7, %v96_v9  ;;  %v124_v12 = vadd.f32 %v123_v10, %v66_v8 }
  0x96   :  { %130 = vst.msk [vmem:[%s288_s4 + $0x1] sm:$0xff] %vm129_vm1, %v97_v11 }
  0x97   :  { %127 = vst.msk [vmem:[%s288_s4] sm:$0x1] %vm126_vm2, %v124_v12 }
  0x98   :  { %v99_v13 = vpop.f32.mrf.mxu2  ;;  %128 = vst.msk [vmem:[%s288_s4 + $0x10] sm:$0x1] %vm126_vm2, %v124_v12 }
  0x99   :  { %v100_v14 = vadd.f32 %v150_v7, %v99_v13 }
  0x9b   :  { %131 = vst.msk [vmem:[%s288_s4 + $0x11] sm:$0xff] %vm129_vm1, %v100_v14 }
  0x9c   :  { %136 = vsyncpa [#allocation3], 1 }
  0x9d   :  { %137 = vsyncpa [#allocation5], 1 }

</bundles_post_ra>
